<compile_context>
chip_gen: v6e
topology: v6e:2x2x1
jax: 0.10.0
libtpu: 0.0.40
codegen_flags: <defaults>
</compile_context>

<pallas_src>
from functools import partial

import jax
import jax.numpy as jnp
from jax.experimental import pallas as pl
from jax.experimental.pallas import tpu as pltpu

batch_size = 3
embed_size = 2
labels = [1, 1, 1, 0, 0, 0]
n_class = len(set(labels))
sentences = ['i love you', 'he loves me', 'she likes baseball',
             'i hate you', 'sorry for that', 'this is awful']
word_list = ' '.join(sentences).split()
vocab = sorted(set(word_list))          # sorted for determinism
vocab_size = len(vocab)
word2idx = {w: i for i, w in enumerate(vocab)}

OUTPUT_CHANNEL = 3
KH = 2                                   # conv kernel height
POOL_H = 2                               # MaxPool2d((2,1)) height
LANES = 128                              # lane-dense width for output / packed slab
PACK_ROWS = 16                           # packed weight slab rows (2 sublane tiles)


def textcnn_kernel(x_ref, wemb_ref, wpack_ref, out_ref, emb_scr,
                   *, B, E, OC, H_out, row_bc, row_wft, row_bf):
    """Fused embedding-gather + conv (MXU) + relu + maxpool + linear.

    x_ref    : (B*L,)        i32  token ids, position-major (row = l*B + b), SMEM
    wemb_ref : (V, E)        f32  embedding table, VMEM
    wpack_ref: (16, 128)     f32  packed weights: rows [k*E:(k+1)*E] = conv tap k
                                  (cols 0:OC), row row_bc = conv bias, rows
                                  [row_wft:row_wft+OC] = fc W^T (cols 0:NC, rest 0),
                                  row row_bf = fc bias (cols 0:NC, rest 0)
    out_ref  : (B, 128)      f32  lane-dense logits slab (cols 0:NC valid)
    emb_scr  : (B*L, E)      f32  VMEM scratch holding the gathered embeddings
    """
    n_tok = x_ref.shape[0]               # B * L
    M = B * H_out                        # conv output rows, pool-group-major

    # --- 1) embedding gather: each token row loaded exactly once -------------
    for r in range(n_tok):
        emb_scr[pl.ds(r, 1), :] = wemb_ref[pl.ds(x_ref[r], 1), :]

    # --- 2) Conv2d(1, OC, (KH, E)) as KH small MXU matmuls -------------------
    # Window element k reads the contiguous sublane slice emb_scr[k*B : k*B+M];
    # rows are (h outer, b inner) so the pool below needs no relayout.
    conv = wpack_ref[row_bc:row_bc + 1, 0:OC]                    # (1, OC) bias
    for k in range(KH):
        wk = wpack_ref[k * E:(k + 1) * E, 0:OC]                  # (E, OC)
        conv = conv + jnp.dot(emb_scr[k * B:k * B + M, :], wk,
                              preferred_element_type=jnp.float32)  # (M, OC)
    relu = jnp.maximum(conv, 0.0)                                # (M, OC)

    # --- 3) MaxPool2d((POOL_H, 1)): contiguous-slab maximum ------------------
    pooled = relu[0:B, :]
    for p in range(1, POOL_H):
        pooled = jnp.maximum(pooled, relu[p * B:(p + 1) * B, :])  # (B, OC)

    # --- 4) Linear(OC, NC) -> lane-dense (B, 128) store ----------------------
    wft = wpack_ref[row_wft:row_wft + OC, :]                     # (OC, 128)
    bf = wpack_ref[row_bf:row_bf + 1, :]                         # (1, 128)
    out_ref[...] = jnp.dot(pooled, wft,
                           preferred_element_type=jnp.float32) + bf


def textcnn_forward(X, W_embed, conv_w, conv_b, fc_w, fc_b):
    """Host-side layout plumbing (weight packing, token reordering) + pallas_call."""
    B, L = X.shape
    OC, kh, E = conv_w.shape
    NC = fc_w.shape[0]
    V = W_embed.shape[0]
    assert kh == KH
    H_out = L - KH + 1
    Hp = H_out // POOL_H
    # The PyTorch module's fc has in_features == OC, which requires Hp == 1.
    assert Hp == 1 and fc_w.shape[1] == OC

    # Packed weight slab layout.
    row_bc = KH * E                      # conv bias row
    row_wft = 8                          # fc weight^T starts at 2nd sublane tile
    row_bf = row_wft + OC                # fc bias row
    assert row_bc + 1 <= row_wft and row_bf + 1 <= PACK_ROWS
    assert OC <= LANES and NC <= LANES

    wpack = jnp.zeros((PACK_ROWS, LANES), jnp.float32)
    for k in range(KH):
        wpack = wpack.at[k * E:(k + 1) * E, :OC].set(conv_w[:, k, :].T)
    wpack = wpack.at[row_bc, :OC].set(conv_b.reshape(-1))
    wpack = wpack.at[row_wft:row_wft + OC, :NC].set(fc_w.T)
    wpack = wpack.at[row_bf, :NC].set(fc_b.reshape(-1))

    # Token ids position-major (row l*B + b) so conv windows are contiguous
    # sublane slices of the gather scratch; clamp (no OOB check on VMEM refs).
    x_lb = jnp.clip(X.T.reshape(-1), 0, V - 1).astype(jnp.int32)

    flops = 2 * B * H_out * KH * E * OC + 2 * B * OC * NC
    bytes_accessed = 4 * (x_lb.size + W_embed.size + wpack.size + B * LANES)

    kernel = partial(textcnn_kernel, B=B, E=E, OC=OC, H_out=H_out,
                     row_bc=row_bc, row_wft=row_wft, row_bf=row_bf)

    out_pad = pl.pallas_call(
        kernel,
        out_shape=jax.ShapeDtypeStruct((B, LANES), jnp.float32),
        in_specs=[
            pl.BlockSpec(memory_space=pltpu.MemorySpace.SMEM),   # token ids
            pl.BlockSpec(memory_space=pltpu.MemorySpace.VMEM),   # embedding table
            pl.BlockSpec(memory_space=pltpu.MemorySpace.VMEM),   # packed weight slab
        ],
        out_specs=pl.BlockSpec(memory_space=pltpu.MemorySpace.VMEM),
        scratch_shapes=[pltpu.VMEM((B * L, E), jnp.float32)],    # gathered embeddings
        cost_estimate=pl.CostEstimate(flops=flops, transcendentals=0,
                                      bytes_accessed=bytes_accessed),
    )(x_lb, W_embed, wpack)

    return out_pad[:, :NC]


def textcnn_reference(X, W_embed, conv_w, conv_b, fc_w, fc_b):
    """Pure-JAX reference mirroring the PyTorch forward (NCHW flatten order)."""
    emb = jnp.take(W_embed, X, axis=0)                         # (B, L, E)
    B, L, E = emb.shape
    H_out = L - KH + 1
    rows = []
    for h in range(H_out):
        win = emb[:, h:h + KH, :]
        c = jnp.einsum('bke,oke->bo', win, conv_w) + conv_b
        rows.append(jnp.maximum(c, 0.0))
    stacked = jnp.stack(rows, axis=1)                          # (B, H_out, OC)
    Hp = H_out // POOL_H
    pooled = jnp.max(
        stacked[:, :Hp * POOL_H, :].reshape(B, Hp, POOL_H, -1), axis=2)  # (B, Hp, OC)
    flat = jnp.transpose(pooled, (0, 2, 1)).reshape(B, -1)     # channel-major flatten
    return flat @ fc_w.T + fc_b


if __name__ == "__main__":
    key = jax.random.PRNGKey(0)
    k_emb, k_wc, k_bc, k_wf, k_bf = jax.random.split(key, 5)

    # Deterministic synthetic parameters (shapes from the module's __init__);
    # the PyTorch conv weight (OC, 1, KH, E) has its in-channel axis squeezed.
    W_embed = jax.random.normal(k_emb, (vocab_size, embed_size), jnp.float32)
    conv_w = 0.1 * jax.random.normal(k_wc, (OUTPUT_CHANNEL, KH, embed_size), jnp.float32)
    conv_b = 0.1 * jax.random.normal(k_bc, (OUTPUT_CHANNEL,), jnp.float32)
    fc_w = 0.1 * jax.random.normal(k_wf, (n_class, OUTPUT_CHANNEL), jnp.float32)
    fc_b = 0.1 * jax.random.normal(k_bf, (n_class,), jnp.float32)

    # Inputs: first `batch_size` sentences tokenized to indices -> (3, 3) int32.
    X = jnp.array([[word2idx[w] for w in s.split()] for s in sentences[:batch_size]],
                  dtype=jnp.int32)

    out = jax.block_until_ready(textcnn_forward(X, W_embed, conv_w, conv_b, fc_w, fc_b))

    ref = textcnn_reference(X, W_embed, conv_w, conv_b, fc_w, fc_b)
    assert out.shape == (batch_size, n_class)
    assert jnp.allclose(out, ref, atol=1e-5, rtol=1e-5), (out, ref)

    print("KERNEL_OK")
</pallas_src>

<mosaic_0001>
module attributes {stable_mosaic.version = 11 : i64} {
  func.func @textcnn_kernel(%arg0: memref<9xi32, #tpu.memory_space<smem>>, %arg1: memref<16x2xf32, #tpu.memory_space<vmem>>, %arg2: memref<16x128xf32, #tpu.memory_space<vmem>>, %arg3: memref<3x128xf32, #tpu.memory_space<vmem>>, %arg4: memref<9x2xf32, #tpu.memory_space<vmem>>) attributes {dimension_semantics = [], scalar_prefetch = 0 : i64, scratch_operands = 1 : i64, tpu.core_type = #tpu.core_type<tc>} {
    %c0 = arith.constant 0 : index
    %0 = memref.load %arg0[%c0] : memref<9xi32, #tpu.memory_space<smem>>
    %1 = arith.index_cast %0 : i32 to index
    %c0_0 = arith.constant 0 : index
    %2 = vector.load %arg1[%1, %c0_0] : memref<16x2xf32, #tpu.memory_space<vmem>>, vector<1x2xf32>
    %c0_1 = arith.constant 0 : index
    %c0_2 = arith.constant 0 : index
    %3 = vector.load %arg4[%c0_1, %c0_2] : memref<9x2xf32, #tpu.memory_space<vmem>>, vector<1x2xf32>
    tpu.vector_store %arg4[%c0_1, %c0_2], %2 {strides = array<i32>} : memref<9x2xf32, #tpu.memory_space<vmem>>, vector<1x2xf32>,
    %c1 = arith.constant 1 : index
    %4 = memref.load %arg0[%c1] : memref<9xi32, #tpu.memory_space<smem>>
    %5 = arith.index_cast %4 : i32 to index
    %c0_3 = arith.constant 0 : index
    %6 = vector.load %arg1[%5, %c0_3] : memref<16x2xf32, #tpu.memory_space<vmem>>, vector<1x2xf32>
    %c1_4 = arith.constant 1 : index
    %c0_5 = arith.constant 0 : index
    %7 = vector.load %arg4[%c1_4, %c0_5] : memref<9x2xf32, #tpu.memory_space<vmem>>, vector<1x2xf32>
    tpu.vector_store %arg4[%c1_4, %c0_5], %6 {strides = array<i32>} : memref<9x2xf32, #tpu.memory_space<vmem>>, vector<1x2xf32>,
    %c2 = arith.constant 2 : index
    %8 = memref.load %arg0[%c2] : memref<9xi32, #tpu.memory_space<smem>>
    %9 = arith.index_cast %8 : i32 to index
    %c0_6 = arith.constant 0 : index
    %10 = vector.load %arg1[%9, %c0_6] : memref<16x2xf32, #tpu.memory_space<vmem>>, vector<1x2xf32>
    %c2_7 = arith.constant 2 : index
    %c0_8 = arith.constant 0 : index
    %11 = vector.load %arg4[%c2_7, %c0_8] : memref<9x2xf32, #tpu.memory_space<vmem>>, vector<1x2xf32>
    tpu.vector_store %arg4[%c2_7, %c0_8], %10 {strides = array<i32>} : memref<9x2xf32, #tpu.memory_space<vmem>>, vector<1x2xf32>,
    %c3 = arith.constant 3 : index
    %12 = memref.load %arg0[%c3] : memref<9xi32, #tpu.memory_space<smem>>
    %13 = arith.index_cast %12 : i32 to index
    %c0_9 = arith.constant 0 : index
    %14 = vector.load %arg1[%13, %c0_9] : memref<16x2xf32, #tpu.memory_space<vmem>>, vector<1x2xf32>
    %c3_10 = arith.constant 3 : index
    %c0_11 = arith.constant 0 : index
    %15 = vector.load %arg4[%c3_10, %c0_11] : memref<9x2xf32, #tpu.memory_space<vmem>>, vector<1x2xf32>
    tpu.vector_store %arg4[%c3_10, %c0_11], %14 {strides = array<i32>} : memref<9x2xf32, #tpu.memory_space<vmem>>, vector<1x2xf32>,
    %c4 = arith.constant 4 : index
    %16 = memref.load %arg0[%c4] : memref<9xi32, #tpu.memory_space<smem>>
    %17 = arith.index_cast %16 : i32 to index
    %c0_12 = arith.constant 0 : index
    %18 = vector.load %arg1[%17, %c0_12] : memref<16x2xf32, #tpu.memory_space<vmem>>, vector<1x2xf32>
    %c4_13 = arith.constant 4 : index
    %c0_14 = arith.constant 0 : index
    %19 = vector.load %arg4[%c4_13, %c0_14] : memref<9x2xf32, #tpu.memory_space<vmem>>, vector<1x2xf32>
    tpu.vector_store %arg4[%c4_13, %c0_14], %18 {strides = array<i32>} : memref<9x2xf32, #tpu.memory_space<vmem>>, vector<1x2xf32>,
    %c5 = arith.constant 5 : index
    %20 = memref.load %arg0[%c5] : memref<9xi32, #tpu.memory_space<smem>>
    %21 = arith.index_cast %20 : i32 to index
    %c0_15 = arith.constant 0 : index
    %22 = vector.load %arg1[%21, %c0_15] : memref<16x2xf32, #tpu.memory_space<vmem>>, vector<1x2xf32>
    %c5_16 = arith.constant 5 : index
    %c0_17 = arith.constant 0 : index
    %23 = vector.load %arg4[%c5_16, %c0_17] : memref<9x2xf32, #tpu.memory_space<vmem>>, vector<1x2xf32>
    tpu.vector_store %arg4[%c5_16, %c0_17], %22 {strides = array<i32>} : memref<9x2xf32, #tpu.memory_space<vmem>>, vector<1x2xf32>,
    %c6 = arith.constant 6 : index
    %24 = memref.load %arg0[%c6] : memref<9xi32, #tpu.memory_space<smem>>
    %25 = arith.index_cast %24 : i32 to index
    %c0_18 = arith.constant 0 : index
    %26 = vector.load %arg1[%25, %c0_18] : memref<16x2xf32, #tpu.memory_space<vmem>>, vector<1x2xf32>
    %c6_19 = arith.constant 6 : index
    %c0_20 = arith.constant 0 : index
    %27 = vector.load %arg4[%c6_19, %c0_20] : memref<9x2xf32, #tpu.memory_space<vmem>>, vector<1x2xf32>
    tpu.vector_store %arg4[%c6_19, %c0_20], %26 {strides = array<i32>} : memref<9x2xf32, #tpu.memory_space<vmem>>, vector<1x2xf32>,
    %c7 = arith.constant 7 : index
    %28 = memref.load %arg0[%c7] : memref<9xi32, #tpu.memory_space<smem>>
    %29 = arith.index_cast %28 : i32 to index
    %c0_21 = arith.constant 0 : index
    %30 = vector.load %arg1[%29, %c0_21] : memref<16x2xf32, #tpu.memory_space<vmem>>, vector<1x2xf32>
    %c7_22 = arith.constant 7 : index
    %c0_23 = arith.constant 0 : index
    %31 = vector.load %arg4[%c7_22, %c0_23] : memref<9x2xf32, #tpu.memory_space<vmem>>, vector<1x2xf32>
    tpu.vector_store %arg4[%c7_22, %c0_23], %30 {strides = array<i32>} : memref<9x2xf32, #tpu.memory_space<vmem>>, vector<1x2xf32>,
    %c8 = arith.constant 8 : index
    %32 = memref.load %arg0[%c8] : memref<9xi32, #tpu.memory_space<smem>>
    %33 = arith.index_cast %32 : i32 to index
    %c0_24 = arith.constant 0 : index
    %34 = vector.load %arg1[%33, %c0_24] : memref<16x2xf32, #tpu.memory_space<vmem>>, vector<1x2xf32>
    %c8_25 = arith.constant 8 : index
    %c0_26 = arith.constant 0 : index
    %35 = vector.load %arg4[%c8_25, %c0_26] : memref<9x2xf32, #tpu.memory_space<vmem>>, vector<1x2xf32>
    tpu.vector_store %arg4[%c8_25, %c0_26], %34 {strides = array<i32>} : memref<9x2xf32, #tpu.memory_space<vmem>>, vector<1x2xf32>,
    %c4_27 = arith.constant 4 : index
    %c0_28 = arith.constant 0 : index
    %36 = vector.load %arg2[%c4_27, %c0_28] : memref<16x128xf32, #tpu.memory_space<vmem>>, vector<1x3xf32>
    %c0_29 = arith.constant 0 : index
    %c0_30 = arith.constant 0 : index
    %37 = vector.load %arg2[%c0_29, %c0_30] : memref<16x128xf32, #tpu.memory_space<vmem>>, vector<2x3xf32>
    %c0_31 = arith.constant 0 : index
    %c0_32 = arith.constant 0 : index
    %38 = vector.load %arg4[%c0_31, %c0_32] : memref<9x2xf32, #tpu.memory_space<vmem>>, vector<6x2xf32>
    %cst = arith.constant dense<0.000000e+00> : vector<6x3xf32>
    %39 = tpu.matmul %38, %37, %cst {dimension_numbers = #tpu.dot_dimension_numbers<[1], [0], [0], [1], [0, 0, 1, 1], [], []>} : vector<6x2xf32>, vector<2x3xf32>, vector<6x3xf32> -> vector<6x3xf32>
    %40 = vector.broadcast %36 : vector<1x3xf32> to vector<6x3xf32>
    %41 = arith.addf %40, %39 : vector<6x3xf32>
    %c2_33 = arith.constant 2 : index
    %c0_34 = arith.constant 0 : index
    %42 = vector.load %arg2[%c2_33, %c0_34] : memref<16x128xf32, #tpu.memory_space<vmem>>, vector<2x3xf32>
    %c3_35 = arith.constant 3 : index
    %c0_36 = arith.constant 0 : index
    %43 = vector.load %arg4[%c3_35, %c0_36] : memref<9x2xf32, #tpu.memory_space<vmem>>, vector<6x2xf32>
    %cst_37 = arith.constant dense<0.000000e+00> : vector<6x3xf32>
    %44 = tpu.matmul %43, %42, %cst_37 {dimension_numbers = #tpu.dot_dimension_numbers<[1], [0], [0], [1], [0, 0, 1, 1], [], []>} : vector<6x2xf32>, vector<2x3xf32>, vector<6x3xf32> -> vector<6x3xf32>
    %45 = arith.addf %41, %44 : vector<6x3xf32>
    %cst_38 = arith.constant 0.000000e+00 : f32
    %46 = vector.broadcast %cst_38 : f32 to vector<6x3xf32>
    %47 = arith.maximumf %45, %46 : vector<6x3xf32>
    %48 = vector.extract_strided_slice %47 {offsets = [0, 0], sizes = [3, 3], strides = [1, 1]} : vector<6x3xf32> to vector<3x3xf32>
    %49 = vector.extract_strided_slice %47 {offsets = [3, 0], sizes = [3, 3], strides = [1, 1]} : vector<6x3xf32> to vector<3x3xf32>
    %50 = arith.maximumf %48, %49 : vector<3x3xf32>
    %c8_39 = arith.constant 8 : index
    %c0_40 = arith.constant 0 : index
    %51 = vector.load %arg2[%c8_39, %c0_40] : memref<16x128xf32, #tpu.memory_space<vmem>>, vector<3x128xf32>
    %c11 = arith.constant 11 : index
    %c0_41 = arith.constant 0 : index
    %52 = vector.load %arg2[%c11, %c0_41] : memref<16x128xf32, #tpu.memory_space<vmem>>, vector<1x128xf32>
    %cst_42 = arith.constant dense<0.000000e+00> : vector<3x128xf32>
    %53 = tpu.matmul %50, %51, %cst_42 {dimension_numbers = #tpu.dot_dimension_numbers<[1], [0], [0], [1], [0, 0, 1, 1], [], []>} : vector<3x3xf32>, vector<3x128xf32>, vector<3x128xf32> -> vector<3x128xf32>
    %54 = vector.broadcast %52 : vector<1x128xf32> to vector<3x128xf32>
    %55 = arith.addf %53, %54 : vector<3x128xf32>
    %c0_43 = arith.constant 0 : index
    %c0_44 = arith.constant 0 : index
    %56 = vector.load %arg3[%c0_43, %c0_44] : memref<3x128xf32, #tpu.memory_space<vmem>>, vector<3x128xf32>
    tpu.vector_store %arg3[%c0_43, %c0_44], %55 {strides = array<i32>} : memref<3x128xf32, #tpu.memory_space<vmem>>, vector<3x128xf32>,
    return
  }
}

</mosaic_0001>

<bundles_post_ra>
// kernel: tpu_custom_call.1
= control target key start
LH: loop header
LB: loop body
LE: loop exit
PB: predicated region body
PF: predicated region fallthrough
CT: control target
= control target key end

     0   :  { %8 = vsyncpa [#allocation5], 0  ;;  %s505_s0 = inlined_call_operand.vmem [shape: s32[9], index: 0, kind: input, shape index: {}]   ;;  %s506_s1 = inlined_call_operand.vmem [shape: f32[16,2], index: 1, kind: input, shape index: {}]   ;;  %s507_s2 = inlined_call_operand.vmem [shape: f32[16,128], index: 2, kind: input, shape index: {}]   ;;  %s508_s3 = inlined_call_operand.hbm [shape: f32[3,128], index: 3, kind: output, shape index: {}]  }
   0x1   :  { %9 = vsyncpa [#allocation4], 0  ;;  %s16_s14 = sshll.u32 %s505_s0, 4  ;;  %s17_s14 = int_to_ptr.vmem [resolvable:$true] %s16_s14 }
   0x2   :  { %s385_s15 = scalar_lea.vmem %s17_s14, 16  ;;  %p390_p1 = scmp.lt.s32.totalorder %s17_s14, %s17_s14 }
   0x3   :  { %p386_p0 = scmp.ne.s32.totalorder %s17_s14, %s385_s15  ;;  %p391_p2 = scmp.lt.s32.totalorder %s385_s15, %s385_s15 }
   0x5   :  { %p392_p3 = por %p391_p2, %p390_p1 }
   0x7   :  { %p393_p4 = pnand %p392_p3, %p386_p0 }
   0x9   :  { %396 = shalt.err (!%p393_p4)
}
   0xa   :  { %s421_s16 = smov [#allocation3]  }
   0xb   :  { %19 = dma.vmem_to_smem %s17_s14, 16, %s421_s16, [#allocation5]  }
   0xc   :  { %417 = dma.done.wait [#allocation5], 16  }
   0xd   :  { %418 = vsyncadd [#allocation5], 4294967280 }
   0xe   :  { %27 = sfence }
   0xf   :  { %v66_v0 = vld [vmem:[%s507_s2] sm:$0x3]  ;;  %vm72_vm0 = vcmask 1041408   ;;  %v422_v1 = vmov 0.0   ;;  %v151_v2 = vld [vmem:[%s507_s2 + $0x2] sm:$0x3] }
  0x10   :  { %366 = vmatprep.subr.mxu0 %v422_v1  ;;  %371 = vmatprep.subr.mxu1 %v422_v1  ;;  %s28_s20 = sld [smem:[#allocation3]]  ;;  %vm423_vm1 = vmmov 0   ;;  %vm31_vm2 = vcmask 8192   ;;  %vm68_vm3 = vcmask 15360   ;;  %v235_v14 = vld [vmem:[%s507_s2 + $0x8] sm:$0x7] }
  0x11   :  { %367 = vmatpush3.msk.msra.mxu0 %vm72_vm0, %v66_v0  ;;  %368 = vmatprep.mubr.msk.f32.mxu0 %vm423_vm1, %v422_v1  ;;  %s344_s21 = sld [smem:[#allocation3 + $0x1]]  ;;  %vm245_vm4 = vcmask 1042432   ;;  %v354_v15 = vld [vmem:[%s507_s2 + $0x4] ss:$0 sm:$0xff]  ;;  %vm241_vm5 = vcmask 23552  }
  0x12   :  { %372 = vmatpush3.msk.msra.mxu1 %vm72_vm0, %v151_v2  ;;  %373 = vmatprep.mubr.msk.f32.mxu1 %vm423_vm1, %v422_v1  ;;  %s345_s22 = sld [smem:[#allocation3 + $0x2]]  ;;  %v357_v25 = vld [vmem:[%s507_s2 + $0xb] ss:$0 sm:$0xff] }
  0x13   :  { %s346_s23 = sld [smem:[#allocation3 + $0x3]]  ;;  %376 = vmatprep.subr.mxu0 %v422_v1 }
  0x14   :  { %s347_s24 = sld [smem:[#allocation3 + $0x4]] }
  0x15   :  { %s348_s25 = sld [smem:[#allocation3 + $0x5]] }
  0x16   :  { %s29_s28 = scalar_lea.vmem %s506_s1, %s28_s20  ;;  %s349_s29 = sld [smem:[#allocation3 + $0x6]] }
  0x17   :  { %v30_v3 = vld [vmem:[%s29_s28] sm:$0x1]  ;;  %s34_s5 = scalar_lea.vmem %s506_s1, %s344_s21  ;;  %s350_s6 = sld [smem:[#allocation3 + $0x7]] }
  0x18   :  { %32 = vst.msk [vmem:[#allocation2] sm:$0x1] %vm31_vm2, %v30_v3  ;;  %v35_v4 = vld [vmem:[%s34_s5] sm:$0x1]  ;;  %s38_s9 = scalar_lea.vmem %s506_s1, %s345_s22  ;;  %s351_s10 = sld [smem:[#allocation3 + $0x8]] }
  0x19   :  { %36 = vst.msk [vmem:[#allocation2 + $0x1] sm:$0x1] %vm31_vm2, %v35_v4  ;;  %v39_v5 = vld [vmem:[%s38_s9] sm:$0x1]  ;;  %s42_s13 = scalar_lea.vmem %s506_s1, %s346_s23 }
  0x1a   :  { %40 = vst.msk [vmem:[#allocation2 + $0x2] sm:$0x1] %vm31_vm2, %v39_v5  ;;  %v43_v6 = vld [vmem:[%s42_s13] sm:$0x1]  ;;  %s46_s16 = scalar_lea.vmem %s506_s1, %s347_s24 }
  0x1b   :  { %44 = vst.msk [vmem:[#allocation2 + $0x3] sm:$0x1] %vm31_vm2, %v43_v6  ;;  %v47_v7 = vld [vmem:[%s46_s16] sm:$0x1]  ;;  %s50_s0 = scalar_lea.vmem %s506_s1, %s348_s25 }
  0x1c   :  { %48 = vst.msk [vmem:[#allocation2 + $0x4] sm:$0x1] %vm31_vm2, %v47_v7  ;;  %v51_v8 = vld [vmem:[%s50_s0] sm:$0x1]  ;;  %s54_s21 = scalar_lea.vmem %s506_s1, %s349_s29 }
  0x1d   :  { %52 = vst.msk [vmem:[#allocation2 + $0x5] sm:$0x1] %vm31_vm2, %v51_v8  ;;  %v55_v9 = vld [vmem:[%s54_s21] sm:$0x1]  ;;  %s58_s24 = scalar_lea.vmem %s506_s1, %s350_s6  ;;  %s424_s6 = smov [#allocation6]  }
  0x1e   :  { %56 = vst.msk [vmem:[#allocation2 + $0x6] sm:$0x1] %vm31_vm2, %v55_v9  ;;  %v59_v10 = vld [vmem:[%s58_s24] sm:$0x1]  ;;  %s62_s25 = scalar_lea.vmem %s506_s1, %s351_s10  ;;  %s326_s7 = sshll.u32 %s424_s6, 4  ;;  %s327_s7 = int_to_ptr.vmem [resolvable:$true] %s326_s7 }
  0x1f   :  { %60 = vst.msk [vmem:[#allocation2 + $0x7] sm:$0x1] %vm31_vm2, %v59_v10  ;;  %v63_v11 = vld [vmem:[%s62_s25] sm:$0x1]  ;;  %s397_s8 = scalar_lea.vmem %s327_s7, 64  ;;  %p402_p6 = scmp.lt.s32.totalorder %s327_s7, %s327_s7 }
  0x20   :  { %64 = vst.msk [vmem:[#allocation2 + $0x8] sm:$0x1] %vm31_vm2, %v63_v11  ;;  %p398_p5 = scmp.ne.s32.totalorder %s327_s7, %s397_s8  ;;  %p403_p7 = scmp.lt.s32.totalorder %s397_s8, %s397_s8 }
  0x22   :  { %p404_p8 = por %p403_p7, %p402_p6 }
  0x24   :  { %v67_v12 = vld [vmem:[#allocation2] sm:$0x3f]  ;;  %p405_p9 = pnand %p404_p8, %p398_p5 }
  0x25   :  { %369 = vmatmul.mubr.msk.f32.vlgmr.msra.gmra.mxu0 %vm68_vm3, %v67_v12 }
  0x26   :  { %378 = vmatprep.mubr.msk.f32.mxu0 %vm423_vm1, %v422_v1  ;;  %377 = vmatpush3.msk.msra.mxu0 %vm245_vm4, %v235_v14 }
  0x27   :  { %v152_v13 = vld [vmem:[#allocation2 + $0x3] sm:$0x3f] }
  0x28   :  { %374 = vmatmul.mubr.msk.f32.vlgmr.msra.gmra.mxu1 %vm68_vm3, %v152_v13 }
  0xe5   :  { %v142_v16 = vpop.f32.mrf.mxu0 }
  0xe6   :  { %v150_v17 = vadd.f32 %v354_v15, %v142_v16 }
  0xe7   :  { %v370_v18 = vpop.f32.mrf.mxu0 }
  0xe8   :  { %v225_v19 = vpop.f32.mrf.mxu1 }
  0xe9   :  { %v229_v20 = vadd.f32 %v225_v19, %v150_v17 }
  0xea   :  { %v375_v21 = vpop.f32.mrf.mxu1 }
  0xeb   :  { %v230_v22 = vmax.f32 %v229_v20, 0.0 }
  0xed   :  { %v232_v23 = vrot.slane %v230_v22, 3 }
  0xef   :  { %v234_v24 = vmax.f32 %v230_v22, %v232_v23 }
  0xf1   :  { %379 = vmatmul.mubr.msk.f32.vlgmr.msra.gmra.mxu0 %vm241_vm5, %v234_v24 }
 0x1b1   :  { %v315_v26 = vpop.f32.mrf.mxu0 }
 0x1b2   :  { %v316_v27 = vadd.f32 %v357_v25, %v315_v26 }
 0x1b3   :  { %v380_v28 = vpop.f32.mrf.mxu0 }
 0x1b4   :  { %319 = vst [vmem:[#allocation6] sm:$0x7] %v316_v27 }
 0x1b5   :  { %408 = shalt.err (!%p405_p9)
}
 0x1b6   :  { %329 = dma.vmem_to_hbm [thread:$0]  %s327_s7, 64, %s508_s3, [#allocation4]  }
 0x1b7   :  { %419 = dma.done.wait [#allocation4], 64  }
 0x1b8   :  { %420 = vsyncadd [#allocation4], 4294967232 }
 0x1b9   :  { %333 = vsyncpa [#allocation4], 1 }
 0x1ba   :  { %334 = vsyncpa [#allocation5], 1 }

</bundles_post_ra>
